<compile_context>
chip_gen: v5e
topology: v5e:2x2
jax: 0.10.0
libtpu: 0.0.40
codegen_flags: <defaults>
</compile_context>

<pallas_src>
import functools

import jax
import jax.numpy as jnp
from jax import lax
from jax.experimental import pallas as pl
from jax.experimental.pallas import tpu as pltpu


_IGNORE_INDEX_DEFAULT = 21


def _ce_kernel(pred_ref, tgt_ref, out_ref, loss_acc, cnt_acc, *,
               ignore_index, hw, tile_hw, cols_per_part, need_pix_mask):
    j = pl.program_id(2)                      # pixel-tile index inside this part
    nj = pl.num_programs(2)

    @pl.when(j == 0)
    def _():
        loss_acc[...] = jnp.zeros_like(loss_acc)
        cnt_acc[...] = jnp.zeros_like(cnt_acc)

    logits = pred_ref[0].astype(jnp.float32)  # (C, T): classes x pixels
    tgt = tgt_ref[0]                          # (1, T) int32 labels
    C, T = logits.shape

    # Numerically stable log-sum-exp over classes (sublane axis); pixels stay
    # lane-dense throughout.
    row_max = jnp.max(logits, axis=0, keepdims=True)                   # (1, T)
    lse = row_max + jnp.log(
        jnp.sum(jnp.exp(logits - row_max), axis=0, keepdims=True))     # (1, T)
    # TODO(synk): on v7x with bf16 logits, computing the exp in bf16 (native
    #             bf16 EUP) would double EUP throughput if it ever binds.

    # Gather the logit at the target class via a (C,1) sublane iota broadcast
    # against the labels (no dynamic gather on TPU).  NOTE: out-of-range
    # labels other than ignore_index silently contribute `lse` instead of
    # raising like PyTorch.
    cls_ids = lax.broadcasted_iota(jnp.int32, (C, 1), 0)
    picked = jnp.sum(jnp.where(cls_ids == tgt, logits, 0.0), axis=0,
                     keepdims=True)                                     # (1, T)

    valid = tgt != ignore_index                                         # (1, T)
    if need_pix_mask:
        # Only emitted when the last real tile is partial or the pixel split
        # creates phantom tiles; uses the *unclamped* tile index so phantom /
        # tail pixels contribute nothing.
        tile_idx = pl.program_id(1) * cols_per_part + j
        pix = tile_idx * tile_hw + lax.broadcasted_iota(jnp.int32, (1, T), 1)
        valid = jnp.logical_and(valid, pix < hw)

    per_px = jnp.where(valid, lse - picked, 0.0)                        # (1, T)
    # Per-step scalar reduce (XLU has spare slots here); scalar accumulation
    # keeps VMEM / vst pressure independent of tile_hw.
    loss_acc[...] += jnp.sum(per_px, axis=1, keepdims=True)
    cnt_acc[...] += jnp.sum(valid.astype(jnp.float32), axis=1, keepdims=True)

    @pl.when(j == nj - 1)
    def _():
        # Single lane-dense (8,128) writeback per (image, part): sublane 0
        # carries the loss partial, sublane 1 the valid-pixel count.
        row = lax.broadcasted_iota(jnp.int32, (8, 128), 0)
        blk = jnp.where(row == 0, loss_acc[...],
                        jnp.where(row == 1, cnt_acc[...], 0.0))
        out_ref[...] = blk.reshape(1, 1, 8, 128)


def _vmem_capacity_bytes():
    try:
        return int(pltpu.get_tpu_info().vmem_capacity_bytes)
    except Exception:                         # fall back to v7x's 64 MiB/core
        return 64 << 20


def _pick_tile_hw(hw, c, itemsize, budget):
    """Pixel-tile width: lane-dense (multiple of 128), sized so the pipeline
    working set (double-buffered logits + 8x-sublane-padded int32 targets)
    fits `budget`, with a ~8 MiB ceiling per logits block."""
    per_px = 2 * c * itemsize + 2 * 8 * 4     # pred x2 buffers + padded tgt x2
    cap = budget // per_px
    cap = min(cap, (8 << 20) // max(1, c * itemsize))
    cap = max(128, (cap // 128) * 128)
    if hw <= cap:
        return hw                             # single full-width tile
    return cap


def ce_loss(pred_nchw, target_nhw, *, ignore_index=_IGNORE_INDEX_DEFAULT,
            tile_hw=None):
    """CrossEntropyLoss(ignore_index=ignore_index, reduction='mean') forward.

    Notes:
      * If every label equals ignore_index the result is 0/0 = NaN, matching
        torch.nn.CrossEntropyLoss 'mean' behavior.
    """
    # TODO(synk): class `weights` (CrossEntropyLoss weight=) not wired in since
    #             the module default is None; would scale per-pixel loss and
    #             the denominator by weight[target].
    # TODO(synk): very large C (vocab-style CE) would need a streaming-C
    #             logsumexp grid axis instead of loading all classes per tile.
    N, C, H, W = pred_nchw.shape
    HW = H * W
    itemsize = jnp.dtype(pred_nchw.dtype).itemsize

    # Free, contiguous reshapes only; logits keep their native dtype on the
    # wire and the kernel promotes to f32 itself.
    pred3d = pred_nchw.reshape(N, C, HW)
    tgt3d = target_nhw.astype(jnp.int32).reshape(N, 1, HW)

    capacity = _vmem_capacity_bytes()
    budget = min(capacity // 2, 32 << 20)     # pipeline working-set budget
    if tile_hw is None:
        tile_hw = _pick_tile_hw(HW, C, itemsize, budget)

    cols = pl.cdiv(HW, tile_hw)
    # Split the pixel reduction into two "parallel" halves so a 2-TC chip
    # (v7x) is busy even at N == 1; at most one phantom tile of overhead on
    # 1-TC chips (v5e / v6e).
    num_parts = 2 if cols >= 2 else 1
    cols_per_part = pl.cdiv(cols, num_parts)
    has_phantom = num_parts * cols_per_part != cols
    need_pix_mask = (HW % tile_hw != 0) or has_phantom

    def pix_block(n, p, j):
        t = p * cols_per_part + j
        if has_phantom:
            t = jnp.minimum(t, cols - 1)      # keep phantom-tile DMAs in bounds
        return (n, 0, t)

    kernel = functools.partial(
        _ce_kernel, ignore_index=ignore_index, hw=HW, tile_hw=tile_hw,
        cols_per_part=cols_per_part, need_pix_mask=need_pix_mask)

    # Explicit, generation-aware VMEM limit: double-buffered logits blocks +
    # 8x-sublane-padded int32 target blocks + output blocks + headroom.
    working = 2 * (C * tile_hw * itemsize + 8 * tile_hw * 4 + 8 * 128 * 4)
    vmem_limit = int(min(capacity, max(working + (8 << 20), 16 << 20)))

    partials = pl.pallas_call(
        kernel,
        out_shape=jax.ShapeDtypeStruct((N, num_parts, 8, 128), jnp.float32),
        grid_spec=pltpu.PrefetchScalarGridSpec(
            num_scalar_prefetch=0,
            grid=(N, num_parts, cols_per_part),
            in_specs=[
                # TODO(synk): if DMA is still exposed at tiny C, try
                #             pipeline_mode=pl.Buffered(3) on the logits spec.
                pl.BlockSpec((1, C, tile_hw), pix_block),
                pl.BlockSpec((1, 1, tile_hw), pix_block),
            ],
            out_specs=pl.BlockSpec((1, 1, 8, 128),
                                   lambda n, p, j: (n, p, 0, 0)),
            scratch_shapes=[
                pltpu.VMEM((1, 1), jnp.float32),   # loss partial accumulator
                pltpu.VMEM((1, 1), jnp.float32),   # valid-pixel count
            ],
        ),
        compiler_params=pltpu.CompilerParams(
            dimension_semantics=("parallel", "parallel", "arbitrary"),
            vmem_limit_bytes=vmem_limit),
    )(pred3d, tgt3d)

    loss_sum = jnp.sum(partials[:, :, 0, 0])
    count = jnp.sum(partials[:, :, 1, 0])
    # reduction='mean' with ignore_index: sum over valid / number of valid.
    return (loss_sum / count).astype(jnp.float32)


def _reference_ce(pred_nchw, target_nhw, ignore_index=_IGNORE_INDEX_DEFAULT):
    """Pure-JAX reference (matches torch.nn.CrossEntropyLoss semantics)."""
    N, C, H, W = pred_nchw.shape
    x = jnp.transpose(pred_nchw, (0, 2, 3, 1)).reshape(-1, C).astype(jnp.float32)
    t = target_nhw.astype(jnp.int32).reshape(-1)
    logp = jax.nn.log_softmax(x, axis=-1)
    valid = t != ignore_index
    t_safe = jnp.where(valid, t, 0)
    nll = -jnp.take_along_axis(logp, t_safe[:, None], axis=-1)[:, 0]
    nll = jnp.where(valid, nll, 0.0)
    return jnp.sum(nll) / jnp.sum(valid.astype(jnp.float32))


if __name__ == "__main__":
    key = jax.random.PRNGKey(0)
    k_pred, k_tgt, k_ign, k_pred2, k_tgt2, k_ign2 = jax.random.split(key, 6)

    # Case 1: small NCHW segmentation logits, default (single-tile) path.
    N, C, H, W = 2, 4, 16, 16
    pred = jax.random.normal(k_pred, (N, C, H, W), dtype=jnp.float32)
    target = jax.random.randint(k_tgt, (N, H, W), 0, C, dtype=jnp.int32)
    ign = jax.random.bernoulli(k_ign, p=0.1, shape=(N, H, W))
    target = jnp.where(ign, _IGNORE_INDEX_DEFAULT, target)

    loss = ce_loss(pred, target)
    jax.block_until_ready(loss)
    ref = _reference_ce(pred, target, _IGNORE_INDEX_DEFAULT)
    assert jnp.allclose(loss, ref, atol=1e-4, rtol=1e-4), (loss, ref)

    # Case 2: force pixel tiling so the 2-way pixel split, tail masking and
    # phantom-tile clamping are exercised (H*W = 272 is not a multiple of the
    # forced 128-lane tile).
    N2, C2, H2, W2 = 2, 5, 16, 17
    pred2 = jax.random.normal(k_pred2, (N2, C2, H2, W2), dtype=jnp.float32)
    target2 = jax.random.randint(k_tgt2, (N2, H2, W2), 0, C2, dtype=jnp.int32)
    ign2 = jax.random.bernoulli(k_ign2, p=0.1, shape=(N2, H2, W2))
    target2 = jnp.where(ign2, _IGNORE_INDEX_DEFAULT, target2)

    loss2 = ce_loss(pred2, target2, tile_hw=128)
    jax.block_until_ready(loss2)
    ref2 = _reference_ce(pred2, target2, _IGNORE_INDEX_DEFAULT)
    assert jnp.allclose(loss2, ref2, atol=1e-4, rtol=1e-4), (loss2, ref2)

    print("KERNEL_OK")
</pallas_src>

<mosaic_0001>
module attributes {stable_mosaic.version = 11 : i64} {
  func.func @_ce_kernel(%arg0: i32, %arg1: i32, %arg2: i32, %arg3: memref<1x4x256xf32, #tpu.memory_space<vmem>>, %arg4: memref<1x1x256xi32, #tpu.memory_space<vmem>>, %arg5: memref<1x1x8x128xf32, #tpu.memory_space<vmem>>, %arg6: memref<1x1xf32, #tpu.memory_space<vmem>>, %arg7: memref<1x1xf32, #tpu.memory_space<vmem>>) attributes {dimension_semantics = [#tpu.dimension_semantics<parallel>, #tpu.dimension_semantics<parallel>, #tpu.dimension_semantics<arbitrary>], iteration_bounds = array<i64: 2, 1, 1>, scalar_prefetch = 0 : i64, scratch_operands = 2 : i64, tpu.core_type = #tpu.core_type<tc>, window_params = [{transform_indices = @transform_0, window_bounds = array<i64: 1, 4, 256>}, {transform_indices = @transform_1, window_bounds = array<i64: 1, 1, 256>}, {transform_indices = @transform_2, window_bounds = array<i64: 1, 1, 8, 128>}]} {
    %c0_i32 = arith.constant 0 : i32
    %0 = arith.cmpi eq, %arg2, %c0_i32 : i32
    %1 = arith.extui %0 : i1 to i32
    %c0_i32_0 = arith.constant 0 : i32
    %2 = arith.cmpi ne, %1, %c0_i32_0 : i32
    scf.if %2 {
      %cst_22 = arith.constant 0.000000e+00 : f32
      %44 = vector.broadcast %cst_22 : f32 to vector<1x1xf32>
      %c0_23 = arith.constant 0 : index
      %c0_24 = arith.constant 0 : index
      %45 = vector.load %arg6[%c0_23, %c0_24] : memref<1x1xf32, #tpu.memory_space<vmem>>, vector<1x1xf32>
      tpu.vector_store %arg6[%c0_23, %c0_24], %44 {strides = array<i32>} : memref<1x1xf32, #tpu.memory_space<vmem>>, vector<1x1xf32>,
      %cst_25 = arith.constant 0.000000e+00 : f32
      %46 = vector.broadcast %cst_25 : f32 to vector<1x1xf32>
      %c0_26 = arith.constant 0 : index
      %c0_27 = arith.constant 0 : index
      %47 = vector.load %arg7[%c0_26, %c0_27] : memref<1x1xf32, #tpu.memory_space<vmem>>, vector<1x1xf32>
      tpu.vector_store %arg7[%c0_26, %c0_27], %46 {strides = array<i32>} : memref<1x1xf32, #tpu.memory_space<vmem>>, vector<1x1xf32>,
    } else {
    }
    %c0 = arith.constant 0 : index
    %c0_1 = arith.constant 0 : index
    %c0_2 = arith.constant 0 : index
    %3 = vector.load %arg3[%c0, %c0_1, %c0_2] : memref<1x4x256xf32, #tpu.memory_space<vmem>>, vector<1x4x256xf32>
    %4 = vector.shape_cast %3 : vector<1x4x256xf32> to vector<4x256xf32>
    %c0_3 = arith.constant 0 : index
    %c0_4 = arith.constant 0 : index
    %c0_5 = arith.constant 0 : index
    %5 = vector.load %arg4[%c0_3, %c0_4, %c0_5] : memref<1x1x256xi32, #tpu.memory_space<vmem>>, vector<1x1x256xi32>
    %6 = vector.shape_cast %5 : vector<1x1x256xi32> to vector<1x256xi32>
    %cst = arith.constant dense<0xFF800000> : vector<256xf32>
    %7 = vector.multi_reduction <maximumf>, %4, %cst [0] : vector<4x256xf32> to vector<256xf32>
    %8 = vector.shape_cast %7 : vector<256xf32> to vector<1x256xf32>
    %9 = vector.broadcast %8 : vector<1x256xf32> to vector<4x256xf32>
    %10 = arith.subf %4, %9 : vector<4x256xf32>
    %11 = math.exp %10 : vector<4x256xf32>
    %cst_6 = arith.constant dense<0.000000e+00> : vector<256xf32>
    %12 = vector.multi_reduction <add>, %11, %cst_6 [0] : vector<4x256xf32> to vector<256xf32>
    %13 = vector.shape_cast %12 : vector<256xf32> to vector<1x256xf32>
    %14 = math.log %13 : vector<1x256xf32>
    %15 = arith.addf %8, %14 : vector<1x256xf32>
    %16 = tpu.iota {dimensions = array<i32: 0>} : vector<4x1xi32>
    %17 = vector.broadcast %16 : vector<4x1xi32> to vector<4x256xi32>
    %18 = vector.broadcast %6 : vector<1x256xi32> to vector<4x256xi32>
    %19 = arith.cmpi eq, %17, %18 : vector<4x256xi32>
    %cst_7 = arith.constant 0.000000e+00 : f32
    %20 = vector.broadcast %cst_7 : f32 to vector<4x256xf32>
    %21 = arith.select %19, %4, %20 : vector<4x256xi1>, vector<4x256xf32>
    %cst_8 = arith.constant dense<0.000000e+00> : vector<256xf32>
    %22 = vector.multi_reduction <add>, %21, %cst_8 [0] : vector<4x256xf32> to vector<256xf32>
    %23 = vector.shape_cast %22 : vector<256xf32> to vector<1x256xf32>
    %c21_i32 = arith.constant 21 : i32
    %24 = vector.broadcast %c21_i32 : i32 to vector<1x256xi32>
    %25 = arith.cmpi ne, %6, %24 : vector<1x256xi32>
    %26 = arith.subf %15, %23 : vector<1x256xf32>
    %cst_9 = arith.constant 0.000000e+00 : f32
    %27 = vector.broadcast %cst_9 : f32 to vector<1x256xf32>
    %28 = arith.select %25, %26, %27 : vector<1x256xi1>, vector<1x256xf32>
    %c0_10 = arith.constant 0 : index
    %c0_11 = arith.constant 0 : index
    %29 = vector.load %arg6[%c0_10, %c0_11] : memref<1x1xf32, #tpu.memory_space<vmem>>, vector<1x1xf32>
    %cst_12 = arith.constant dense<0.000000e+00> : vector<1xf32>
    %30 = vector.multi_reduction <add>, %28, %cst_12 [1] : vector<1x256xf32> to vector<1xf32>
    %31 = vector.shape_cast %30 : vector<1xf32> to vector<1x1xf32>
    %32 = arith.addf %29, %31 : vector<1x1xf32>
    %c0_13 = arith.constant 0 : index
    %c0_14 = arith.constant 0 : index
    %33 = vector.load %arg6[%c0_13, %c0_14] : memref<1x1xf32, #tpu.memory_space<vmem>>, vector<1x1xf32>
    tpu.vector_store %arg6[%c0_13, %c0_14], %32 {strides = array<i32>} : memref<1x1xf32, #tpu.memory_space<vmem>>, vector<1x1xf32>,
    %c0_15 = arith.constant 0 : index
    %c0_16 = arith.constant 0 : index
    %34 = vector.load %arg7[%c0_15, %c0_16] : memref<1x1xf32, #tpu.memory_space<vmem>>, vector<1x1xf32>
    %35 = arith.extui %25 : vector<1x256xi1> to vector<1x256xi32>
    %36 = arith.sitofp %35 : vector<1x256xi32> to vector<1x256xf32>
    %cst_17 = arith.constant dense<0.000000e+00> : vector<1xf32>
    %37 = vector.multi_reduction <add>, %36, %cst_17 [1] : vector<1x256xf32> to vector<1xf32>
    %38 = vector.shape_cast %37 : vector<1xf32> to vector<1x1xf32>
    %39 = arith.addf %34, %38 : vector<1x1xf32>
    %c0_18 = arith.constant 0 : index
    %c0_19 = arith.constant 0 : index
    %40 = vector.load %arg7[%c0_18, %c0_19] : memref<1x1xf32, #tpu.memory_space<vmem>>, vector<1x1xf32>
    tpu.vector_store %arg7[%c0_18, %c0_19], %39 {strides = array<i32>} : memref<1x1xf32, #tpu.memory_space<vmem>>, vector<1x1xf32>,
    %c0_i32_20 = arith.constant 0 : i32
    %41 = arith.cmpi eq, %arg2, %c0_i32_20 : i32
    %42 = arith.extui %41 : i1 to i32
    %c0_i32_21 = arith.constant 0 : i32
    %43 = arith.cmpi ne, %42, %c0_i32_21 : i32
    scf.if %43 {
      %44 = tpu.iota {dimensions = array<i32: 0>} : vector<8x128xi32>
      %c0_i32_22 = arith.constant 0 : i32
      %45 = vector.broadcast %c0_i32_22 : i32 to vector<8x128xi32>
      %46 = arith.cmpi eq, %44, %45 : vector<8x128xi32>
      %c0_23 = arith.constant 0 : index
      %c0_24 = arith.constant 0 : index
      %47 = vector.load %arg6[%c0_23, %c0_24] : memref<1x1xf32, #tpu.memory_space<vmem>>, vector<1x1xf32>
      %c1_i32 = arith.constant 1 : i32
      %48 = vector.broadcast %c1_i32 : i32 to vector<8x128xi32>
      %49 = arith.cmpi eq, %44, %48 : vector<8x128xi32>
      %c0_25 = arith.constant 0 : index
      %c0_26 = arith.constant 0 : index
      %50 = vector.load %arg7[%c0_25, %c0_26] : memref<1x1xf32, #tpu.memory_space<vmem>>, vector<1x1xf32>
      %cst_27 = arith.constant 0.000000e+00 : f32
      %51 = vector.shape_cast %50 : vector<1x1xf32> to vector<1x1xf32>
      %52 = vector.broadcast %51 : vector<1x1xf32> to vector<8x128xf32>
      %53 = vector.broadcast %cst_27 : f32 to vector<8x128xf32>
      %54 = arith.select %49, %52, %53 : vector<8x128xi1>, vector<8x128xf32>
      %55 = vector.shape_cast %47 : vector<1x1xf32> to vector<1x1xf32>
      %56 = vector.broadcast %55 : vector<1x1xf32> to vector<8x128xf32>
      %57 = arith.select %46, %56, %54 : vector<8x128xi1>, vector<8x128xf32>
      %58 = vector.shape_cast %57 : vector<8x128xf32> to vector<1x1x8x128xf32>
      %c0_28 = arith.constant 0 : index
      %c0_29 = arith.constant 0 : index
      %c0_30 = arith.constant 0 : index
      %c0_31 = arith.constant 0 : index
      %59 = vector.load %arg5[%c0_28, %c0_29, %c0_30, %c0_31] : memref<1x1x8x128xf32, #tpu.memory_space<vmem>>, vector<1x1x8x128xf32>
      tpu.vector_store %arg5[%c0_28, %c0_29, %c0_30, %c0_31], %58 {strides = array<i32>} : memref<1x1x8x128xf32, #tpu.memory_space<vmem>>, vector<1x1x8x128xf32>,
    } else {
    }
    return
  }
  func.func @transform_0(%arg0: i32, %arg1: i32, %arg2: i32) -> (i32, i32, i32) {
    %c1_i32 = arith.constant 1 : i32
    %0 = arith.muli %arg1, %c1_i32 : i32
    %1 = arith.addi %0, %arg2 : i32
    %c0_i32 = arith.constant 0 : i32
    %c0_i32_0 = arith.constant 0 : i32
    return %arg0, %c0_i32, %1 : i32, i32, i32
  }
  func.func @transform_1(%arg0: i32, %arg1: i32, %arg2: i32) -> (i32, i32, i32) {
    %c1_i32 = arith.constant 1 : i32
    %0 = arith.muli %arg1, %c1_i32 : i32
    %1 = arith.addi %0, %arg2 : i32
    %c0_i32 = arith.constant 0 : i32
    %c0_i32_0 = arith.constant 0 : i32
    return %arg0, %c0_i32, %1 : i32, i32, i32
  }
  func.func @transform_2(%arg0: i32, %arg1: i32, %arg2: i32) -> (i32, i32, i32, i32) {
    %c0_i32 = arith.constant 0 : i32
    %c0_i32_0 = arith.constant 0 : i32
    %c0_i32_1 = arith.constant 0 : i32
    return %arg0, %arg1, %c0_i32, %c0_i32_0 : i32, i32, i32, i32
  }
}

</mosaic_0001>

<bundles_post_ra>
// kernel: tpu_custom_call.1
= control target key start
LH: loop header
LB: loop body
LE: loop exit
PB: predicated region body
PF: predicated region fallthrough
CT: control target
= control target key end

     0   :  { %7 = vsyncpa [#allocation5], 0  ;;  %s957_s0 = inlined_call_operand.hbm [shape: f32[2,4,256], index: 0, kind: input, shape index: {}]   ;;  %s958_s1 = inlined_call_operand.hbm [shape: s32[2,1,256], index: 1, kind: input, shape index: {}]   ;;  %s959_s2 = inlined_call_operand.hbm [shape: f32[2,1,8,128], index: 2, kind: output, shape index: {}]  }
   0x1   :  { %9 = vsyncpa [#allocation5 + $0x1], 0 }
   0x2   :  { %10 = vsyncpa [#allocation8], 0 }
   0x3   :  { %12 = vsyncpa [#allocation8 + $0x1], 0 }
   0x4   :  { %13 = vsyncpa [#allocation6], 0 }
   0x5   :  { %15 = vsyncpa [#allocation6 + $0x1], 0  ;;  %s784_s9 = smov 0   ;;  %s786_s10 = smov 0  }
   0x6   :  { %s788_s11 = smov 0   ;;  %s790_s12 = smov 0  }
   0x7   :  { %s792_s13 = smov 0   ;;  %s794_s14 = smov 0  }
   0x8 LB: > { %s521_s15 = sadd.s32 4294967295, %s765_s14   ;;  %s522_s16 = sadd.s32 4294967294, %s765_s14   ;;  %s765_s14 = sphi %s794_s14, %s21_s14   ;;  %s761_s13 = sphi %s792_s13, %s969_s13   ;;  %s757_s12 = sphi %s790_s12, %s968_s12   ;;  %s753_s11 = sphi %s788_s11, %s967_s11   ;;  %s749_s10 = sphi %s786_s10, %s966_s10   ;;  %s745_s9 = sphi %s784_s9, %s965_s9  }
   0x9   : > { %s40_s17 = sadd.s32 1, %s761_s13  ;;  %s51_s18 = sadd.s32 1, %s753_s11 }
   0xa   : > { %p42_p0 = scmp.ge.s32.totalorder %s40_s17, 2  ;;  %p58_p1 = scmp.ne.s32.totalorder %s753_s11, %s749_s10 }
   0xb   : > { %p59_p2 = scmp.eq.s32.totalorder %s765_s14, 0  ;;  %p64_p3 = scmp.ne.s32.totalorder %s749_s10, %s745_s9 }
   0xc   : > { %s971_s17 = smov (%p42_p0, %s40_s17), 0  ;;  %p65_p5 = scmp.eq.s32.totalorder %s521_s15, 0 }
   0xd   : > { %p825_p4 = por %p59_p2, %p58_p1  ;;  %s46_s20 = ssub.s32 %s761_s13, %s971_s17 }
   0xe   : > { %p120_p6 = scmp.eq.s32.totalorder %s521_s15, 1  ;;  %p49_p7 = scmp.eq.s32.totalorder %s46_s20, 0 }
   0xf   : > { %p831_p8 = por %p65_p5, %p64_p3  ;;  %p126_p10 = scmp.eq.s32.totalorder %s522_s16, 1 }
  0x10   : > { %p835_p9 = por %p120_p6, %p58_p1  ;;  %p524_p12 = scmp.ge.s32.totalorder %s765_s14, 2 }
  0x11   : > { %s840_s23 = scalar_select %p49_p7, %s753_s11, %s51_s18  }
  0x12   : > { %p842_p11 = por %p126_p10, %p64_p3  ;;  %p557_p13 = scmp.lt.s32.totalorder %s765_s14, 2 }
  0x13   : > { %s146_s25 = sand.u32 1, %s753_s11   ;;  %s539_s27 = sshll.u32 %s761_s13, 3 }
  0x14   : > { %s525_s26 = sshll.u32 %s146_s25, 3  ;;  %s158_s30 = scalar_lea.hbm %s957_s0, %s539_s27 }
  0x15   : > { %s150_s3 = scalar_lea.vmem [#allocation4], %s525_s26  ;;  %s160_s5 = sshll.u32 %s158_s30, 4  ;;  %s161_s5 = int_to_ptr.hbm [resolvable:$true] %s160_s5 }
  0x16   : > { %s162_s4 = sshll.u32 %s150_s3, 4  ;;  %p855_p0 = pnand %p557_p13, %p825_p4  ;;  %s163_s4 = int_to_ptr.vmem [resolvable:$true] %s162_s4 }
  0x17   : > { %p530_p1 = scmp.ge.s32.totalorder %s765_s14, 1  ;;  %p189_p2 = scmp.lt.s32.totalorder %s765_s14, 3 }
  0x18   : > { %s147_s7 = scalar_lea.sflag [#allocation5], %s146_s25  ;;  %s528_s8 = sshll.u32 %s146_s25, 1 }
  0x19   : > { %549 = dma.hbm_to_vmem [thread:$0]  (!%p855_p0), %s161_s5, 128, %s163_s4, %s147_s7  }
  0x1a   : > { %p190_p3 = pnand %p530_p1, %p189_p2  ;;  %s529_s15 = sshll.u32 %s761_s13, 1 }
  0x1b   : > { %s180_s20 = scalar_lea.hbm %s958_s1, %s529_s15  ;;  %s173_s26 = scalar_lea.vmem [#allocation7], %s528_s8 }
  0x1c   : > { %s184_s19 = sshll.u32 %s173_s26, 4  ;;  %s182_s27 = sshll.u32 %s180_s20, 4  ;;  %s185_s19 = int_to_ptr.vmem [resolvable:$true] %s184_s19  ;;  %s183_s27 = int_to_ptr.hbm [resolvable:$true] %s182_s27 }
  0x1d   : > { %s170_s28 = scalar_lea.sflag [#allocation8], %s146_s25  ;;  %193 = sbr.rel (%p190_p3) target bundleno = 365 (0x16d), region = 28 }
  0x1e   : > { %552 = dma.hbm_to_vmem [thread:$0]  (!%p855_p0), %s183_s27, 32, %s185_s19, %s170_s28  }
  0x1f   : > { %s870_s29 = sand.u32 (!%p190_p3), 1, %s749_s10  }
  0x20   : > { %s531_s30 = sshll.u32 (!%p190_p3), %s870_s29, 3  ;;  %s196_s3 = scalar_lea.sflag (!%p190_p3), [#allocation5], %s870_s29 }
  0x21   : > { %s199_s4 = scalar_lea.vmem (!%p190_p3), [#allocation4], %s531_s30 }
  0x22   : > { %732 = dma.done.wait (%p831_p8), %s196_s3, 128  }
  0x23   : > { %734 = vsyncadd (%p831_p8), %s196_s3, 4294967168  ;;  %s532_s25 = sshll.u32 %s870_s29, 1  ;;  %s206_s5 = scalar_lea.sflag [#allocation8], %s870_s29 }
  0x24   : > { %s209_s6 = scalar_lea.vmem [#allocation7], %s532_s25 }
  0x25   : > { %736 = dma.done.wait (%p831_p8), %s206_s5, 32  }
  0x26   : > { %738 = vsyncadd (%p831_p8), %s206_s5, 4294967264  ;;  %vm244_vm0 = vcmask 0   ;;  %v767_v0 = vmov 0.0   ;;  %v888_v1 = vld [vmem:[%s209_s6] sm:$0x3]  ;;  %v247_v2 = vld [vmem:[%s199_s4] sm:$0xff]  ;;  %v304_v30 = vlaneseq }
  0x27   : > { %245 = vst.msk [vmem:[#allocation2] sm:$0x1] %vm244_vm0, %v767_v0  ;;  %vm331_vm1 = vcmp.ne.s32.totalorder %v888_v1, 21  ;;  %vm337_vm2 = vcmask 1040384   ;;  %vm255_vm3 = vcmask 1043456   ;;  %v306_v36 = vperm.slane %v888_v1, 0 }
  0x28   : > { %246 = vst.msk [vmem:[#allocation3] sm:$0x1] %vm244_vm0, %v767_v0  ;;  %v534_v3 = vsel %vm331_vm1, 1.0, %v767_v0  ;;  %v898_v33 = vshrl.u32 %v304_v30, 7  ;;  %v307_v37 = vperm.slane %v888_v1, 1  ;;  %s536_s21 = sshll.u32 %s757_s12, 3 }
  0x29   : > { %250 = vst [vmem:[#allocation1] ss:$2 sm:$0xff] %v247_v2  ;;  %v359_v4 = vperm.slane %v534_v3, 0  ;;  %v360_v5 = vperm.slane %v534_v3, 1  ;;  %s404_s15 = scalar_lea.hbm %s959_s2, %s536_s21  ;;  %s235_s16 = scalar_lea.vmem [#allocation9], %s531_s30 }
  0x2a   : > { %vm308_vm4 = vcmp.eq.s32.totalorder %v898_v33, %v306_v36  ;;  %vm309_vm5 = vcmp.eq.s32.totalorder %v898_v33, %v307_v37  ;;  %vm375_vm6 = vcmp.eq.s32.totalorder %v898_v33, 1  ;;  %s406_s18 = sshll.u32 %s235_s16, 4  ;;  %s408_s20 = sshll.u32 %s404_s15, 4  ;;  %vm373_vm7 = vcmp.eq.s32.totalorder %v898_v33, 0  ;;  %s407_s18 = int_to_ptr.vmem [resolvable:$true] %s406_s18  ;;  %s409_s20 = int_to_ptr.hbm [resolvable:$true] %s408_s20 }
  0x2b   : > { %v363_v6 = vsel %vm337_vm2, %v359_v4, 0.0  ;;  %v364_v7 = vsel %vm337_vm2, %v360_v5, 0.0  ;;  %s393_s12 = scalar_lea.sflag [#allocation6], %s870_s29  ;;  %s693_s26 = sshra.s32 %s409_s20, 4  ;;  %s694_s26 = int_to_ptr.hbm [resolvable:$true] %s693_s26 }
  0x2c   : > { %v365_v8 = vadd.f32 %v364_v7, %v363_v6  ;;  %s695_s19 = scalar_lea.hbm %s694_s26, 8  ;;  %s699_s30 = scalar_lea.hbm %s959_s2, 16 }
  0x2d   : > { %p696_p4 = scmp.ne.s32.totalorder %s694_s26, %s695_s19  ;;  %p700_p7 = scmp.lt.s32.totalorder %s694_s26, %s959_s2 }
  0x2e   : > { %366 = vadd.xlane.f32.xlu0 %v365_v8  ;;  %v341_v1 = vld [vmem:[#allocation2] sm:$0x1]  ;;  %p701_p8 = scmp.lt.s32.totalorder %s699_s30, %s695_s19 }
  0x2f   : > { %p697_p5 = pnand %p696_p4, %p835_p9 }
  0x30   : > { %v251_v9 = vld.sshfl [vmem:[#allocation1] sm:$0xff pattern:$0x75316420]  ;;  %v252_v10 = vld.sshfl [vmem:[#allocation1 + $0x8] sm:$0xff pattern:$0x75316420]  ;;  %p702_p10 = por %p701_p8, %p700_p7 }
  0x31   : > { %v256_v11 = vsel %vm255_vm3, %v251_v9, -inf  ;;  %v263_v12 = vsel %vm255_vm3, %v252_v10, -inf  ;;  %p698_p6 = pneg %p697_p5 }
  0x32   : > { %v257_v13 = vrot.slane %v256_v11, 4  ;;  %v264_v14 = vrot.slane %v263_v12, 4 }
  0x33   : > { %p703_p13 = pnand %p702_p10, %p698_p6 }
  0x34   : > { %v258_v15 = vmax.f32 %v256_v11, %v257_v13  ;;  %v265_v16 = vmax.f32 %v263_v12, %v264_v14 }
  0x36   : > { %v259_v17 = vrot.slane %v258_v15, 2  ;;  %v266_v18 = vrot.slane %v265_v16, 2 }
  0x38   : > { %v260_v19 = vmax.f32 %v258_v15, %v259_v17  ;;  %v267_v20 = vmax.f32 %v265_v16, %v266_v18 }
  0x3a   : > { %v261_v21 = vrot.slane %v260_v19, 1  ;;  %v268_v22 = vrot.slane %v267_v20, 1 }
  0x3c   : > { %v262_v23 = vmax.f32 %v260_v19, %v261_v21  ;;  %v269_v24 = vmax.f32 %v267_v20, %v268_v22  ;;  %v355_v21 = vld [vmem:[#allocation3] sm:$0x1] }
  0x3e   : > { %v272_v25 = vrot.slane %v269_v24, 4 }
  0x40   : > { %v273_v26 = vsel %vm255_vm3, %v262_v23, %v272_v25  ;;  %v768_v25 = vmov 0  }
  0x41   : > { %v275_v27 = vsub.f32 %v247_v2, %v273_v26  ;;  %609 = vset.pattern.permute.xlu1 %v768_v25  ;;  %610 = vset.pattern.permute.xlu0 %v768_v25 }
  0x43   : > { %v276_v28 = vmul.f32 1.442695, %v275_v27 }
  0x45   : > { %613 = vpow2.f32 %v276_v28 }
  0x4b   : > { %v614_v29 = vpop.eup %613 }
  0x4c   : > { %279 = vst [vmem:[#allocation1] ss:$2 sm:$0xff] %v614_v29 }
  0x53   : > { %v280_v31 = vld.sshfl [vmem:[#allocation1] sm:$0xff pattern:$0x75316420]  ;;  %v281_v32 = vld.sshfl [vmem:[#allocation1 + $0x8] sm:$0xff pattern:$0x75316420] }
  0x54   : > { %310 = vst [vmem:[#allocation1] ss:$2 sm:$0xff] %v247_v2  ;;  %v284_v34 = vsel %vm255_vm3, %v280_v31, 0.0  ;;  %v291_v35 = vsel %vm255_vm3, %v281_v32, 0.0 }
  0x55   : > { %v285_v38 = vrot.slane %v284_v34, 4  ;;  %v292_v39 = vrot.slane %v291_v35, 4 }
  0x57   : > { %v286_v40 = vadd.f32 %v285_v38, %v284_v34  ;;  %v293_v41 = vadd.f32 %v292_v39, %v291_v35 }
  0x59   : > { %v287_v42 = vrot.slane %v286_v40, 2  ;;  %v294_v43 = vrot.slane %v293_v41, 2 }
  0x5b   : > { %v311_v44 = vld.sshfl [vmem:[#allocation1] sm:$0xff pattern:$0x75316420]  ;;  %v312_v45 = vld.sshfl [vmem:[#allocation1 + $0x8] sm:$0xff pattern:$0x75316420]  ;;  %v288_v46 = vadd.f32 %v287_v42, %v286_v40  ;;  %v295_v47 = vadd.f32 %v294_v43, %v293_v41 }
  0x5c   : > { %v315_v48 = vsel %vm308_vm4, %v311_v44, 0.0  ;;  %v316_v49 = vsel %vm309_vm5, %v312_v45, 0.0 }
  0x5d   : > { %v317_v50 = vsel %vm255_vm3, %v315_v48, 0.0  ;;  %v324_v51 = vsel %vm255_vm3, %v316_v49, 0.0  ;;  %v289_v52 = vrot.slane %v288_v46, 1  ;;  %v296_v53 = vrot.slane %v295_v47, 1 }
  0x5e   : > { %v318_v54 = vrot.slane %v317_v50, 4  ;;  %v325_v55 = vrot.slane %v324_v51, 4 }
  0x5f   : > { %v290_v56 = vadd.f32 %v289_v52, %v288_v46  ;;  %v297_v57 = vadd.f32 %v296_v53, %v295_v47 }
  0x60   : > { %v319_v58 = vadd.f32 %v318_v54, %v317_v50  ;;  %v326_v59 = vadd.f32 %v325_v55, %v324_v51 }
  0x61   : > { %615 = vlog2.f32 %v290_v56 }
  0x62   : > { %v320_v60 = vrot.slane %v319_v58, 2  ;;  %v327_v61 = vrot.slane %v326_v59, 2  ;;  %617 = vlog2.f32 %v297_v57 }
  0x64   : > { %v321_v62 = vadd.f32 %v320_v60, %v319_v58  ;;  %v328_v63 = vadd.f32 %v327_v61, %v326_v59 }
  0x66   : > { %v322_v0 = vrot.slane %v321_v62, 1  ;;  %v329_v2 = vrot.slane %v328_v63, 1 }
  0x67   : > { %v616_v3 = vpop.eup %615 }
  0x68   : > { %v618_v4 = vpop.eup %617  ;;  %v299_v5 = vmul.f32 0.6931472, %v616_v3  ;;  %v323_v7 = vadd.f32 %v322_v0, %v321_v62  ;;  %v330_v8 = vadd.f32 %v329_v2, %v328_v63 }
  0x69   : > { %v301_v6 = vmul.f32 0.6931472, %v618_v4 }
  0x6a   : > { %v302_v9 = vadd.f32 %v299_v5, %v262_v23 }
  0x6b   : > { %v303_v10 = vadd.f32 %v301_v6, %v269_v24 }
  0x6c   : > { %v332_v11 = vsub.f32 %v302_v9, %v323_v7 }
  0x6d   : > { %v333_v12 = vsub.f32 %v303_v10, %v330_v8 }
  0x6f   : > { %v336_v13 = vrot.slane %v333_v12, 7 }
  0x71   : > { %v338_v14 = vsel %vm337_vm2, %v332_v11, %v336_v13 }
  0x72   : > { %v340_v15 = vsel %vm331_vm1, %v338_v14, 0.0 }
  0x73   : > { %v343_v16 = vperm.slane %v340_v15, 0  ;;  %v344_v17 = vperm.slane %v340_v15, 1 }
  0x75   : > { %v347_v18 = vsel %vm337_vm2, %v343_v16, 0.0  ;;  %v348_v19 = vsel %vm337_vm2, %v344_v17, 0.0 }
  0x76   : > { %v349_v20 = vadd.f32 %v348_v19, %v347_v18 }
  0x78   : > { %350 = vadd.xlane.f32.xlu0 %v349_v20 }
  0xa1   : > { %v367_v22 = vpop.xlane.xlu0 %366 }
  0xa2   : > { %v368_v23 = vadd.f32 %v367_v22, %v355_v21 }
  0xa4   : > { %369 = vst.msk [vmem:[#allocation3] sm:$0x1] %vm244_vm0, %v368_v23 }
  0xab   : > { %v611_v24 = vld [vmem:[#allocation3] ss:$0 sm:$0xff] }
  0xac   : > { %380 = vperm.xlu1 %609, %v611_v24  }
  0xeb   : > { %v351_v26 = vpop.xlane.xlu0 %350 }
  0xec   : > { %v352_v27 = vadd.f32 %v351_v26, %v341_v1 }
  0xee   : > { %354 = vst.msk [vmem:[#allocation2] sm:$0x1] %vm244_vm0, %v352_v27 }
  0xf5   : > { %v612_v28 = vld [vmem:[#allocation2] ss:$0 sm:$0xff] }
  0xf6   : > { %387 = vperm.xlu1 %609, %v612_v28  }
 0x11e   : > { %v381_v29 = vpop.permute.xlu1 %380 }
 0x11f   : > { %v383_v30 = vsel %vm375_vm6, %v381_v29, 0.0 }
 0x168   : > { %v388_v31 = vpop.permute.xlu1 %387 }
 0x169   : > { %v390_v32 = vsel %vm373_vm7, %v388_v31, %v383_v30 }
 0x16a   : > { %391 = vst [vmem:[%s235_s16] sm:$0xff] %v390_v32 }
 0x16b   : > { %706 = shalt.err (!%p703_p13)
}
 0x16c   : > { %544 = dma.vmem_to_hbm [thread:$0]  (%p835_p9), %s407_s18, 128, %s409_s20, %s393_s12  }
 0x16d PF: > { %s420_s29 = sand.u32 1, %s745_s9   ;;  %p554_p0 = pnand %p524_p12, %p842_p11 }
 0x16e   : > { %s421_s25 = scalar_lea.sflag [#allocation6], %s420_s29 }
 0x16f   : > { %p555_p1 = pneg %p554_p0 }
 0x171   : > { %740 = dma.done.wait (%p555_p1), %s421_s25, 128  }
 0x172   : > { %742 = vsyncadd (%p555_p1), %s421_s25, 4294967168  ;;  %s21_s14 = sadd.s32 1, %s765_s14   ;;  %s965_s9 = smov %s749_s10 }
 0x173   : > { %p18_p2 = scmp.ge.s32.totalorder %s21_s14, 4   ;;  %s966_s10 = smov %s753_s11 }
 0x174   : > { %s967_s11 = smov %s840_s23  ;;  %s968_s12 = smov %s761_s13 }
 0x175   : > { %s969_s13 = smov %s971_s17  ;;  %20 = sbr.rel (!%p18_p2) target bundleno = 8 (0x8), region = 94 }
 0x17a   :  { %427 = vsyncpa [#allocation5], 1 }
 0x17b   :  { %429 = vsyncpa [#allocation5 + $0x1], 1 }
 0x17c   :  { %430 = vsyncpa [#allocation8], 1 }
 0x17d   :  { %432 = vsyncpa [#allocation8 + $0x1], 1 }
 0x17e   :  { %433 = vsyncpa [#allocation6], 1 }
 0x17f   :  { %435 = vsyncpa [#allocation6 + $0x1], 1 }

</bundles_post_ra>
